<compile_context>
chip_gen: v5e
topology: v5e:2x2
jax: 0.10.0
libtpu: 0.0.40
codegen_flags: <defaults>
</compile_context>

<pallas_src>
import functools

import jax
import jax.numpy as jnp
from jax.experimental import pallas as pl
from jax.experimental.pallas import tpu as pltpu


def _round_up(x, m):
    return ((x + m - 1) // m) * m


def _vmem_budgets():
    """Per-TPU-generation (tile budget bytes, scoped vmem_limit_bytes)."""
    cap = None
    try:
        info_fn = getattr(pltpu, "get_tpu_info", None)
        if info_fn is not None:
            cap = int(getattr(info_fn(), "vmem_capacity_bytes", 0)) or None
    except Exception:
        cap = None
    if cap is not None and cap >= 128 * 1024 * 1024:
        # v5e / v6e: 128 MiB physical VMEM -> larger tiles, deeper overlap.
        return 56 * 1024 * 1024, 96 * 1024 * 1024
    # v7x (64 MiB physical VMEM) or unknown generation: stay conservative.
    return 36 * 1024 * 1024, 48 * 1024 * 1024


# ----------------------------------------------------------------------------
# Pallas kernels: row-wise dot product via an MXU contraction
# ----------------------------------------------------------------------------
def _bcast_scores_kernel(items_ref, rhs_ref, out_ref, *, compute_dtype):
    # items_ref : (tb, k*D) streamed, lane-packed item rows
    # rhs_ref   : (k*D, k)  resident block-diagonal user column(s)
    # out_ref   : (tb, k)
    lhs = items_ref[...].astype(compute_dtype)          # no-op when dtypes match
    out_ref[...] = jnp.dot(
        lhs, rhs_ref[...], preferred_element_type=jnp.float32
    ).astype(out_ref.dtype)


def _full_scores_kernel(u_ref, x_ref, rhs_ref, out_ref):
    # u_ref/x_ref : (tb, k*D) streamed tiles;  rhs_ref : (k*D, k) block-diag ones
    # Products are formed exactly in f32 on the VPU; the MXU only performs the
    # segmented sum (f32 accumulate).
    prod = u_ref[...].astype(jnp.float32) * x_ref[...].astype(jnp.float32)
    out_ref[...] = jnp.dot(
        prod, rhs_ref[...], preferred_element_type=jnp.float32
    ).astype(out_ref.dtype)


# ----------------------------------------------------------------------------
# Wrapper
# ----------------------------------------------------------------------------
def pieckuea_forward(user_emb, items_emb, *, block_rows=None):
    """scores = sum(user_emb * items_emb, dim=-1)   (PyTorch PIECKUEA.forward)."""
    user_emb = jnp.asarray(user_emb)
    items_emb = jnp.asarray(items_emb)
    if user_emb.shape[-1] != items_emb.shape[-1]:
        raise ValueError("embedding dims must match")
    D = int(user_emb.shape[-1])

    out_dtype = jnp.result_type(user_emb.dtype, items_emb.dtype)
    if not jnp.issubdtype(out_dtype, jnp.floating):
        out_dtype = jnp.dtype(jnp.float32)
    compute_dtype = out_dtype

    batch_shape = jnp.broadcast_shapes(user_emb.shape[:-1], items_emb.shape[:-1])
    N = 1
    for s in batch_shape:
        N *= int(s)
    if N == 0 or D == 0:
        return jnp.zeros(batch_shape, out_dtype)

    def _prep(x):
        """Return (x_2d, broadcast_over_rows); never copy a [1,D] -> [N,D]."""
        x2 = x.reshape(-1, D)
        if x2.shape[0] == N:
            return x2, False
        if x2.shape[0] == 1:
            return x2, True                    # stays (1, D); folded into the RHS
        # Partial/ragged broadcast (never produced by the module).
        # TODO(synk): express as a constant block-0 index_map over the broadcast
        # batch dims instead of materializing the copy in HBM.
        return jnp.broadcast_to(x, batch_shape + (D,)).reshape(N, D), False

    user_2d, user_bcast = _prep(user_emb)
    items_2d, items_bcast = _prep(items_emb)

    # ---- lane packing for small D: [N, D] -> [N/k, k*D] (free, row-major) ----
    k = 1
    if D < 128:
        k = max(1, 128 // D)
        while k > 1 and N % k:
            k -= 1
    Np, Dp = N // k, k * D

    # ---- streamed operand(s) + the small resident MXU RHS (built on host side) ----
    if user_bcast or items_bcast:
        col_2d, lhs_2d = (user_2d, items_2d) if user_bcast else (items_2d, user_2d)
        col = col_2d.reshape(D, 1).astype(compute_dtype)
        rhs = jnp.kron(jnp.eye(k, dtype=compute_dtype), col)      # (k*D, k) block-diag
        streamed = (lhs_2d.reshape(Np, Dp),)
        kernel = functools.partial(_bcast_scores_kernel, compute_dtype=compute_dtype)
    else:
        rhs = jnp.kron(jnp.eye(k, dtype=jnp.float32),
                       jnp.ones((D, 1), jnp.float32))              # segmented-sum RHS
        streamed = (user_2d.reshape(Np, Dp), items_2d.reshape(Np, Dp))
        kernel = _full_scores_kernel

    # ---- row-tile sizing from the per-generation VMEM budget ----
    budget, vmem_limit = _vmem_budgets()
    out_itemsize = jnp.dtype(out_dtype).itemsize
    in_row_bytes = sum(_round_up(Dp, 128) * a.dtype.itemsize for a in streamed)
    out_row_bytes = _round_up(k, 128) * out_itemsize        # (tb, k) tile is lane-padded
    resident_bytes = 2 * _round_up(Dp, 8) * 128 * rhs.dtype.itemsize
    step_bytes = 2 * (in_row_bytes + out_row_bytes)          # x2: double buffering
    tb_cap = max(8, (budget - resident_bytes) // step_bytes)

    if block_rows is not None:
        tb = min(int(block_rows), Np)
    elif Np <= 1024:
        tb = min(Np, tb_cap)                                 # tiny problem: one block
    else:
        # Keep >= 2 grid steps so v7x's two TensorCores both get work and the
        # DMA/compute pipeline actually overlaps.
        tb = min(tb_cap, pl.cdiv(Np, 2))
    tb = min(tb, Np)
    if tb < Np:
        tb = max(8, (tb // 256) * 256 if tb >= 512 else (tb // 8) * 8)

    grid = (pl.cdiv(Np, tb),)

    lhs_spec = pl.BlockSpec((tb, Dp), lambda i: (i, 0))
    rhs_spec = pl.BlockSpec((Dp, k), lambda i: (0, 0))       # resident across the grid
    in_specs = [lhs_spec for _ in streamed] + [rhs_spec]

    bytes_accessed = (sum(a.size * a.dtype.itemsize for a in streamed)
                      + rhs.size * rhs.dtype.itemsize + N * out_itemsize)
    flops = 2 * Np * Dp * k + (Np * Dp if len(streamed) == 2 else 0)

    out2d = pl.pallas_call(
        kernel,
        out_shape=jax.ShapeDtypeStruct((Np, k), out_dtype),
        grid_spec=pl.GridSpec(
            grid=grid,
            in_specs=in_specs,
            out_specs=pl.BlockSpec((tb, k), lambda i: (i, 0)),
        ),
        compiler_params=pltpu.CompilerParams(
            dimension_semantics=("parallel",),               # row tiles independent
            vmem_limit_bytes=int(vmem_limit),
        ),
        cost_estimate=pl.CostEstimate(
            flops=int(flops), transcendentals=0, bytes_accessed=int(bytes_accessed)),
    )(*streamed, rhs)

    return out2d.reshape(batch_shape)


# ----------------------------------------------------------------------------
# Module parameters (deterministic init, matching __init__ of PIECKUEA)
# ----------------------------------------------------------------------------
def init_pieckuea_params(key, dim):
    # self._user_emb = nn.Embedding(1, dim); nn.init.normal_(weight, std=0.01)
    user_emb_weight = 0.01 * jax.random.normal(key, (1, dim), dtype=jnp.float32)
    return {"_user_emb_weight": user_emb_weight}
    # TODO(synk): train_/train_on_user_emb/eval_ (BCE autograd, top-k ranking,
    # attack loop) are host-side training logic; only forward scoring is a kernel.


# ----------------------------------------------------------------------------
# Demo
# ----------------------------------------------------------------------------
if __name__ == "__main__":
    key = jax.random.PRNGKey(0)
    k_param, k_user, k_items, k_bi, k_wu, k_wi = jax.random.split(key, 6)

    # Shapes consistent with the module: m_item items of dim 32, one user embedding.
    m_item, dim = 8, 32
    params = init_pieckuea_params(k_param, dim)
    items_emb = jax.random.normal(k_items, (m_item, dim), dtype=jnp.float32)

    # Path 1: module forward -- (1, dim) user broadcast against (m_item, dim) items.
    user_emb = params["_user_emb_weight"]
    scores = jax.block_until_ready(pieckuea_forward(user_emb, items_emb))
    ref = jnp.sum(user_emb * items_emb, axis=-1)
    assert scores.shape == (m_item,)
    assert bool(jnp.allclose(scores, ref, atol=1e-3, rtol=1e-3))

    # Path 2: train_on_user_emb-style scoring -- full [N, D] x [N, D].
    user_b = jax.random.normal(k_user, (m_item, dim), dtype=jnp.float32)
    scores2 = jax.block_until_ready(pieckuea_forward(user_b, items_emb))
    ref2 = jnp.sum(user_b * items_emb, axis=-1)
    # Tolerance allows for MXU f32 pass-decomposition rounding; structural bugs
    # would produce O(1) errors and still trip this.
    assert bool(jnp.allclose(scores2, ref2, atol=2e-2, rtol=2e-2))

    # Path 3: broadcast user, multi-block pipelined path with a ragged packed tail
    # (dim=32 -> k=4 lane packing, 3000 rows -> 750 packed rows, tb=256 -> grid 3).
    n_big = 3000
    big_i = jax.random.normal(k_bi, (n_big, dim), dtype=jnp.float32)
    scores3 = jax.block_until_ready(
        pieckuea_forward(user_emb, big_i, block_rows=256))
    ref3 = jnp.sum(user_emb * big_i, axis=-1)
    assert scores3.shape == (n_big,)
    assert bool(jnp.allclose(scores3, ref3, atol=1e-3, rtol=1e-3))

    # Path 4: full x full with D=128 (no lane packing, (D,1) ones RHS), ragged tail.
    n_w, d_w = 640, 128
    wide_u = jax.random.normal(k_wu, (n_w, d_w), dtype=jnp.float32)
    wide_i = jax.random.normal(k_wi, (n_w, d_w), dtype=jnp.float32)
    scores4 = jax.block_until_ready(
        pieckuea_forward(wide_u, wide_i, block_rows=256))
    ref4 = jnp.sum(wide_u * wide_i, axis=-1)
    assert bool(jnp.allclose(scores4, ref4, atol=2e-2, rtol=2e-2))

    print("KERNEL_OK")
</pallas_src>

<mosaic_0001>
module attributes {stable_mosaic.version = 11 : i64} {
  func.func @_bcast_scores_kernel(%arg0: i32, %arg1: memref<2x128xf32, #tpu.memory_space<vmem>>, %arg2: memref<128x4xf32, #tpu.memory_space<vmem>>, %arg3: memref<2x4xf32, #tpu.memory_space<vmem>>) attributes {dimension_semantics = [#tpu.dimension_semantics<parallel>], iteration_bounds = array<i64: 1>, scalar_prefetch = 0 : i64, scratch_operands = 0 : i64, tpu.core_type = #tpu.core_type<tc>, window_params = [{transform_indices = @transform_0, window_bounds = array<i64: 2, 128>}, {pipeline_mode = #tpu.pipeline_mode<synchronous>, transform_indices = @transform_1, window_bounds = array<i64: 128, 4>}, {transform_indices = @transform_2, window_bounds = array<i64: 2, 4>}]} {
    %c0 = arith.constant 0 : index
    %c0_0 = arith.constant 0 : index
    %0 = vector.load %arg1[%c0, %c0_0] : memref<2x128xf32, #tpu.memory_space<vmem>>, vector<2x128xf32>
    %c0_1 = arith.constant 0 : index
    %c0_2 = arith.constant 0 : index
    %1 = vector.load %arg2[%c0_1, %c0_2] : memref<128x4xf32, #tpu.memory_space<vmem>>, vector<128x4xf32>
    %cst = arith.constant dense<0.000000e+00> : vector<2x4xf32>
    %2 = tpu.matmul %0, %1, %cst {dimension_numbers = #tpu.dot_dimension_numbers<[1], [0], [0], [1], [0, 0, 1, 1], [], []>} : vector<2x128xf32>, vector<128x4xf32>, vector<2x4xf32> -> vector<2x4xf32>
    %c0_3 = arith.constant 0 : index
    %c0_4 = arith.constant 0 : index
    %3 = vector.load %arg3[%c0_3, %c0_4] : memref<2x4xf32, #tpu.memory_space<vmem>>, vector<2x4xf32>
    tpu.vector_store %arg3[%c0_3, %c0_4], %2 {strides = array<i32>} : memref<2x4xf32, #tpu.memory_space<vmem>>, vector<2x4xf32>,
    return
  }
  func.func @transform_0(%arg0: i32) -> (i32, i32) {
    %c0_i32 = arith.constant 0 : i32
    %c0_i32_0 = arith.constant 0 : i32
    return %arg0, %c0_i32 : i32, i32
  }
  func.func @transform_1(%arg0: i32) -> (i32, i32) {
    %c0_i32 = arith.constant 0 : i32
    %c0_i32_0 = arith.constant 0 : i32
    %c0_i32_1 = arith.constant 0 : i32
    return %c0_i32, %c0_i32_0 : i32, i32
  }
  func.func @transform_2(%arg0: i32) -> (i32, i32) {
    %c0_i32 = arith.constant 0 : i32
    %c0_i32_0 = arith.constant 0 : i32
    return %arg0, %c0_i32 : i32, i32
  }
}

</mosaic_0001>

<bundles_post_ra>
// kernel: tpu_custom_call.1
= control target key start
LH: loop header
LB: loop body
LE: loop exit
PB: predicated region body
PF: predicated region fallthrough
CT: control target
= control target key end

     0   :  { %s164_s0 = inlined_call_operand.vmem [shape: f32[2,128], index: 0, kind: input, shape index: {}]   ;;  %s165_s1 = inlined_call_operand.vmem [shape: f32[128,4], index: 1, kind: input, shape index: {}]   ;;  %s166_s2 = inlined_call_operand.hbm [shape: f32[2,4], index: 2, kind: output, shape index: {}]  }
   0x1   :  { %v28_v0 = vld [vmem:[%s165_s1 + $0x78] sm:$0xff]  ;;  %v27_v1 = vld [vmem:[%s165_s1 + $0x70] sm:$0xff]  ;;  %v26_v2 = vld [vmem:[%s165_s1 + $0x68] sm:$0xff] }
   0x2   :  { %29 = vmatpush.msra.mxu0 %v28_v0  ;;  %v25_v3 = vld [vmem:[%s165_s1 + $0x60] sm:$0xff] }
   0x4   :  { %30 = vmatpush.msra.mxu0 %v27_v1 }
   0x6   :  { %31 = vmatpush.msra.mxu0 %v26_v2 }
   0x7   :  { %7 = vsyncpa [#allocation3], 0  ;;  %v24_v4 = vld [vmem:[%s165_s1 + $0x58] sm:$0xff]  ;;  %v23_v5 = vld [vmem:[%s165_s1 + $0x50] sm:$0xff]  ;;  %s94_s15 = smov [#allocation2]   ;;  %s58_s19 = sshll.u32 %s166_s2, 4  ;;  %s59_s19 = int_to_ptr.hbm [resolvable:$true] %s58_s19 }
   0x8   :  { %32 = vmatpush.msra.mxu0 %v25_v3  ;;  %v22_v6 = vld [vmem:[%s165_s1 + $0x48] sm:$0xff]  ;;  %v21_v7 = vld [vmem:[%s165_s1 + $0x40] sm:$0xff]  ;;  %v20_v8 = vld [vmem:[%s165_s1 + $0x38] sm:$0xff]  ;;  %s56_s16 = sshll.u32 %s94_s15, 4  ;;  %vm49_vm0 = vcmask 25600   ;;  %s57_s16 = int_to_ptr.vmem [resolvable:$true] %s56_s16 }
   0x9   :  { %v19_v9 = vld [vmem:[%s165_s1 + $0x30] sm:$0xff]  ;;  %v18_v10 = vld [vmem:[%s165_s1 + $0x28] sm:$0xff]  ;;  %v17_v11 = vld [vmem:[%s165_s1 + $0x20] sm:$0xff] }
   0xa   :  { %33 = vmatpush.msra.mxu0 %v24_v4  ;;  %v16_v12 = vld [vmem:[%s165_s1 + $0x18] sm:$0xff]  ;;  %v15_v13 = vld [vmem:[%s165_s1 + $0x10] sm:$0xff]  ;;  %v14_v14 = vld [vmem:[%s165_s1 + $0x8] sm:$0xff] }
   0xb   :  { %v13_v15 = vld [vmem:[%s165_s1] sm:$0xff] }
   0xc   :  { %34 = vmatpush.msra.mxu0 %v23_v5  ;;  %v12_v16 = vld [vmem:[%s164_s0] sm:$0x3] }
   0xe   :  { %35 = vmatpush.msra.mxu0 %v22_v6 }
  0x10   :  { %36 = vmatpush.msra.mxu0 %v21_v7 }
  0x12   :  { %37 = vmatpush.msra.mxu0 %v20_v8 }
  0x14   :  { %38 = vmatpush.msra.mxu0 %v19_v9 }
  0x16   :  { %39 = vmatpush.msra.mxu0 %v18_v10 }
  0x18   :  { %40 = vmatpush.msra.mxu0 %v17_v11 }
  0x1a   :  { %41 = vmatpush.msra.mxu0 %v16_v12 }
  0x1c   :  { %42 = vmatpush.msra.mxu0 %v15_v13 }
  0x1e   :  { %43 = vmatpush.msra.mxu0 %v14_v14 }
  0x20   :  { %44 = vmatpush.msra.mxu0 %v13_v15 }
  0x21   :  { %45 = vmatmul.f32.vlgmr.msra.gmra.mxu0 %v12_v16 }
  0x9e   :  { %v46_v17 = vpop.f32.mrf.mxu0 }
  0x9f   :  { %50 = vst.msk [vmem:[#allocation2] sm:$0x3] %vm49_vm0, %v46_v17 }
  0xa0   :  { %61 = dma.vmem_to_hbm [thread:$0]  %s57_s16, 32, %s59_s19, [#allocation3]  }
  0xa1   :  { %92 = dma.done.wait [#allocation3], 32  }
  0xa2   :  { %93 = vsyncadd [#allocation3], 4294967264 }
  0xa3   :  { %66 = vsyncpa [#allocation3], 1 }

</bundles_post_ra>
